<compile_context>
chip_gen: v7x
topology: tpu7x:2x2x1
jax: 0.10.0
libtpu: 0.0.40
codegen_flags: <defaults>
</compile_context>

<pallas_src>
import functools
import math

import jax
import jax.numpy as jnp
import numpy as np
from jax import lax
from jax.experimental import pallas as pl
from jax.experimental.pallas import tpu as pltpu


def _round_up(n, m):
    return ((n + m - 1) // m) * m


def _nbytes(shape, dtype):
    n = 1
    for d in shape:
        n *= int(d)
    return n * jnp.dtype(dtype).itemsize


def _vmem_limit(weight_bytes, streamed_bytes, scratch_bytes):
    """Scoped-VMEM request: tight estimate, capped at 80% of physical VMEM."""
    # Weights are grid-invariant but conservatively counted double-buffered.
    est = 2 * weight_bytes + 2 * streamed_bytes + scratch_bytes
    est = int(est * 1.3) + (2 << 20)          # layout padding + compiler slack
    cap = None
    get_info = getattr(pltpu, "get_tpu_info", None)
    if get_info is not None:
        try:
            cap = int(getattr(get_info(), "vmem_capacity_bytes", 0)) or None
        except Exception:
            cap = None
    if cap is None:
        cap = 64 * 2**20                      # conservative: v7x per-TensorCore
    budget = int(cap * 0.8)                   # leave the compiler headroom
    return min(budget, max(32 * 2**20, est))


# --------------------------------------------------------------------------
# Kernel 1: c_kv = LayerNorm(x @ W_kv^T)  and head-major V = c_kv @ W_uv
# --------------------------------------------------------------------------
def _ckv_v_kernel(x_ref, wkv_ref, gamma_ref, beta_ref, wuv_ref,
                  ckv_ref, ckvb_ref, v_ref,
                  *, dc_real, dc_pad, num_heads, head_dim_pad, eps):
    x = x_ref[0]                                                    # (t1, d_in) bf16
    pre = jnp.dot(x, wkv_ref[...],
                  preferred_element_type=jnp.float32)               # (t1, dc_p) f32

    # Two-pass LayerNorm statistics (avoids E[x^2]-E[x]^2 cancellation).
    # Padded columns of `pre` are exactly zero, so `centered` there equals
    # -mean; subtract that known contribution instead of masking.
    inv_n = 1.0 / float(dc_real)
    mean = jnp.sum(pre, axis=-1, keepdims=True) * inv_n
    centered = pre - mean
    var = (jnp.sum(centered * centered, axis=-1, keepdims=True)
           - float(dc_pad - dc_real) * mean * mean) * inv_n
    rstd = lax.rsqrt(var + eps)
    # gamma/beta are zero in padded columns -> padded c_kv columns stay 0.
    ckv = centered * rstd * gamma_ref[...] + beta_ref[...]          # (t1, dc_p) f32
    ckv_ref[0] = ckv
    ckv_b = ckv.astype(jnp.bfloat16)
    ckvb_ref[0] = ckv_b

    # All heads in one MXU call (N = H*hd_p fills the 256-wide MXU on v6e/v7x),
    # then lane-aligned per-head slices into the head-major output slab.
    v_all = jnp.dot(ckv_b, wuv_ref[...],
                    preferred_element_type=jnp.float32).astype(jnp.bfloat16)
    for h in range(num_heads):
        v_ref[0, h] = v_all[:, h * head_dim_pad:(h + 1) * head_dim_pad]


# --------------------------------------------------------------------------
# Kernel 2: flash-style latent attention + fused output projection
# --------------------------------------------------------------------------
def _mla_attn_kernel(q_ref, absk_ref, ckv_ref, v_ref, wout_ref, bout_ref,
                     o_ref, tmp_ref, m_ref, l_ref, acc_ref,
                     *, num_heads, tq, tk, past_length, seq_len):
    qi = pl.program_id(1)
    ki = pl.program_id(2)
    nk = pl.num_programs(2)
    q_start = qi * tq
    k_start = ki * tk

    @pl.when(ki == 0)
    def _init():
        m_ref[...] = jnp.full(m_ref.shape, -jnp.inf, dtype=m_ref.dtype)
        l_ref[...] = jnp.zeros(l_ref.shape, dtype=l_ref.dtype)
        acc_ref[...] = jnp.zeros(acc_ref.shape, dtype=acc_ref.dtype)
        # q_h @ absorbed_k[h] for all heads (scale folded into absorbed_k),
        # cached in VMEM and reused for every KV tile of this query block.
        tmp = lax.dot_general(
            q_ref[0], absk_ref[...],
            dimension_numbers=(((2,), (1,)), ((0,), (0,))),
            preferred_element_type=jnp.float32)                     # (H, tq, dc_p)
        tmp_ref[...] = tmp.reshape(tmp_ref.shape).astype(tmp_ref.dtype)

    valid = k_start <= q_start + (tq - 1) + past_length
    # Edge tiles cross the causal diagonal or contain padded key rows; only
    # those pay for mask construction / select.
    is_edge = jnp.logical_or(k_start + (tk - 1) > q_start + past_length,
                             k_start + tk > seq_len)

    def scores():
        # tmp @ c_kv^T, contracting last dims (no transpose materialized).
        s2 = lax.dot_general(
            tmp_ref[...], ckv_ref[0],
            dimension_numbers=(((1,), (1,)), ((), ())),
            preferred_element_type=jnp.float32)                     # (H*tq, tk)
        return s2.reshape(num_heads, tq, tk)

    def online_update(s):
        m_prev = m_ref[...]
        m_new = jnp.maximum(m_prev, jnp.max(s, axis=-1, keepdims=True))
        m_safe = jnp.maximum(m_new, jnp.float32(-1e30))   # no -inf-(-inf) NaN
        alpha = jnp.exp(m_prev - m_safe)
        p = jnp.exp(s - m_safe)
        l_ref[...] = alpha * l_ref[...] + jnp.sum(p, axis=-1, keepdims=True)
        pv = lax.dot_general(
            p.astype(jnp.bfloat16), v_ref[0],
            dimension_numbers=(((2,), (1,)), ((0,), (0,))),
            preferred_element_type=jnp.float32)                     # (H, tq, hd_p)
        acc_ref[...] = alpha * acc_ref[...] + pv
        m_ref[...] = m_new

    @pl.when(jnp.logical_and(valid, is_edge))
    def _masked_tile():
        s = scores()
        row = q_start + lax.broadcasted_iota(jnp.int32, (tq, tk), 0)
        col = k_start + lax.broadcasted_iota(jnp.int32, (tq, tk), 1)
        keep = jnp.logical_and(col <= row + past_length, col < seq_len)
        online_update(jnp.where(keep[None], s, -jnp.inf))

    @pl.when(jnp.logical_and(valid, jnp.logical_not(is_edge)))
    def _inner_tile():
        online_update(scores())

    @pl.when(ki == nk - 1)
    def _finalize():
        inv_l = pl.reciprocal(l_ref[...], approx=True)              # EUP, not VALU
        ctx = (acc_ref[...] * inv_l).astype(jnp.bfloat16)           # (H, tq, hd_p)
        # Per-head output projection summed over heads == concat + matmul.
        # TODO(synk): for production d_out/head counts on v7x (64 MiB VMEM),
        # stream W_out through a third kernel instead of holding it resident.
        outs = lax.dot_general(
            ctx, wout_ref[...],
            dimension_numbers=(((2,), (1,)), ((0,), (0,))),
            preferred_element_type=jnp.float32)                     # (H, tq, do_p)
        o_ref[0] = jnp.sum(outs, axis=0) + bout_ref[...]


# --------------------------------------------------------------------------
# Wrapper
# --------------------------------------------------------------------------
def mla_forward(x, params, *, num_heads, past_length=0, eps=1e-5,
                q_tile=256, kv_tile=256):
    """x: (b, T, d_in) f32.  Returns (context_vec (b,T,d_out), c_kv (b,T,dc))."""
    # TODO(synk): kv_cache concatenation path not implemented (kv_cache=None assumed).
    b, T, d_in = x.shape
    w_q, w_kv, w_uk, w_uv, w_out, b_out, gamma, beta = (
        params["w_q"], params["w_kv"], params["w_uk"], params["w_uv"],
        params["w_out"], params["b_out"], params["gamma"], params["beta"])
    d_out = w_q.shape[0]
    dc = w_kv.shape[0]
    assert d_out % num_heads == 0
    hd = d_out // num_heads
    assert d_in == d_out, "absorbed-k / q-view path requires d_in == num_heads*head_dim"
    assert past_length >= 0

    f32, bf16 = jnp.float32, jnp.bfloat16

    # Lane-dense padded feature dims (multiples of 128); zero padding in the
    # weights is mathematically inert and sliced off at the end.
    hd_p = _round_up(hd, 128)
    dc_p = _round_up(dc, 128)
    do_p = _round_up(d_out, 128)

    # Sequence tiles (multiples of 16 for bf16 sublane alignment).  q and kv
    # tiles may differ: tk sets the scores-matmul MXU width, larger tq
    # amortizes KV re-reads.
    tq = _round_up(min(q_tile, _round_up(T, 16)), 16)
    tk = _round_up(min(kv_tile, _round_up(T, 16)), 16)
    T_pad = _round_up(T, math.lcm(tq, tk))
    nq, nk = T_pad // tq, T_pad // tk
    t1 = tk                       # kernel-1 sequence tile (divides T_pad)
    nt1 = T_pad // t1

    # ---------------- parameter / layout glue (plain JAX) -----------------
    scale = 1.0 / float(hd) ** 0.5
    absorbed = (w_q @ w_uk).reshape(num_heads, hd, dc) * scale      # scale folded in
    absk_p = (jnp.zeros((num_heads, hd_p, dc_p), f32)
              .at[:, :hd, :dc].set(absorbed).astype(bf16))
    wkv_p = jnp.zeros((d_in, dc_p), f32).at[:, :dc].set(w_kv.T).astype(bf16)
    gamma_p = jnp.zeros((1, dc_p), f32).at[0, :dc].set(gamma)
    beta_p = jnp.zeros((1, dc_p), f32).at[0, :dc].set(beta)
    # W_uv packed head-major along the lane axis: (dc_p, H*hd_p).
    wuv_r = w_uv.reshape(num_heads, hd, dc).transpose(0, 2, 1)      # (H, dc, hd)
    wuv_p = (jnp.zeros((num_heads, dc_p, hd_p), f32)
             .at[:, :dc, :hd].set(wuv_r)
             .transpose(1, 0, 2).reshape(dc_p, num_heads * hd_p).astype(bf16))
    wout_r = w_out.T.reshape(num_heads, hd, d_out)                  # (H, hd, d_out)
    wout_p = (jnp.zeros((num_heads, hd_p, do_p), f32)
              .at[:, :hd, :d_out].set(wout_r).astype(bf16))
    bout_p = jnp.zeros((1, do_p), f32).at[0, :d_out].set(b_out)

    x_pad = jnp.zeros((b, T_pad, d_in), f32).at[:, :T, :].set(x).astype(bf16)
    q4 = x.reshape(b, T, num_heads, hd).transpose(0, 2, 1, 3)       # (b, H, T, hd)
    q_p = (jnp.zeros((b, num_heads, T_pad, hd_p), f32)
           .at[:, :, :T, :hd].set(q4).astype(bf16))

    const = lambda shape: pl.BlockSpec(shape, lambda *_: (0,) * len(shape))

    # ---------------- kernel 1: c_kv + head-major V ------------------------
    vmem1 = _vmem_limit(
        weight_bytes=(_nbytes((d_in, dc_p), bf16) + 2 * _nbytes((1, dc_p), f32)
                      + _nbytes((dc_p, num_heads * hd_p), bf16)),
        streamed_bytes=(_nbytes((1, t1, d_in), bf16)
                        + _nbytes((1, t1, dc_p), f32)
                        + _nbytes((1, t1, dc_p), bf16)
                        + _nbytes((1, num_heads, t1, hd_p), bf16)),
        scratch_bytes=0)

    ckv_f32, ckv_b, v_hm = pl.pallas_call(
        functools.partial(_ckv_v_kernel, dc_real=dc, dc_pad=dc_p,
                          num_heads=num_heads, head_dim_pad=hd_p, eps=eps),
        out_shape=(jax.ShapeDtypeStruct((b, T_pad, dc_p), f32),
                   jax.ShapeDtypeStruct((b, T_pad, dc_p), bf16),
                   jax.ShapeDtypeStruct((b, num_heads, T_pad, hd_p), bf16)),
        grid_spec=pltpu.PrefetchScalarGridSpec(
            num_scalar_prefetch=0,
            grid=(b, nt1),
            in_specs=[
                pl.BlockSpec((1, t1, d_in), lambda bi, ti: (bi, ti, 0)),
                const((d_in, dc_p)),
                const((1, dc_p)),
                const((1, dc_p)),
                const((dc_p, num_heads * hd_p)),
            ],
            out_specs=(
                pl.BlockSpec((1, t1, dc_p), lambda bi, ti: (bi, ti, 0)),
                pl.BlockSpec((1, t1, dc_p), lambda bi, ti: (bi, ti, 0)),
                pl.BlockSpec((1, num_heads, t1, hd_p),
                             lambda bi, ti: (bi, 0, ti, 0)),
            ),
        ),
        compiler_params=pltpu.CompilerParams(
            dimension_semantics=("parallel", "parallel"),
            vmem_limit_bytes=vmem1),
    )(x_pad, wkv_p, gamma_p, beta_p, wuv_p)

    # ---------------- kernel 2: flash-style latent attention ---------------
    # Causal KV-tile DMA elision: clamp the kv block index so causally dead
    # steps re-present the previously fetched block (Pallas elides the
    # re-DMA); pl.when inside the kernel skips their compute.
    def _kv_limit(qi):
        return jnp.maximum((qi * tq + tq - 1 + past_length) // tk, 0)

    def ckv_map(bi, qi, ki):
        return (bi, jnp.minimum(ki, _kv_limit(qi)), 0)

    def v_map(bi, qi, ki):
        return (bi, 0, jnp.minimum(ki, _kv_limit(qi)), 0)

    vmem2 = _vmem_limit(
        weight_bytes=(_nbytes((num_heads, hd_p, dc_p), bf16)
                      + _nbytes((num_heads, hd_p, do_p), bf16)
                      + _nbytes((1, do_p), f32)),
        streamed_bytes=(_nbytes((1, num_heads, tq, hd_p), bf16)
                        + _nbytes((1, tk, dc_p), bf16)
                        + _nbytes((1, num_heads, tk, hd_p), bf16)
                        + _nbytes((1, tq, do_p), f32)),
        scratch_bytes=(_nbytes((num_heads * tq, dc_p), bf16)
                       + 2 * _nbytes((num_heads, tq, 128), f32)
                       + _nbytes((num_heads, tq, hd_p), f32)))

    ctx_p = pl.pallas_call(
        functools.partial(_mla_attn_kernel, num_heads=num_heads, tq=tq,
                          tk=tk, past_length=past_length, seq_len=T),
        out_shape=jax.ShapeDtypeStruct((b, T_pad, do_p), f32),
        grid_spec=pltpu.PrefetchScalarGridSpec(
            num_scalar_prefetch=0,
            grid=(b, nq, nk),
            in_specs=[
                pl.BlockSpec((1, num_heads, tq, hd_p),
                             lambda bi, qi, ki: (bi, 0, qi, 0)),
                const((num_heads, hd_p, dc_p)),
                pl.BlockSpec((1, tk, dc_p), ckv_map),
                pl.BlockSpec((1, num_heads, tk, hd_p), v_map),
                const((num_heads, hd_p, do_p)),
                const((1, do_p)),
            ],
            out_specs=pl.BlockSpec((1, tq, do_p),
                                   lambda bi, qi, ki: (bi, qi, 0)),
            scratch_shapes=[
                pltpu.VMEM((num_heads * tq, dc_p), bf16),   # cached q @ absorbed_k
                pltpu.VMEM((num_heads, tq, 1), f32),        # running max
                pltpu.VMEM((num_heads, tq, 1), f32),        # running sum
                pltpu.VMEM((num_heads, tq, hd_p), f32),     # output accumulator
            ],
        ),
        compiler_params=pltpu.CompilerParams(
            dimension_semantics=("parallel", "parallel", "arbitrary"),
            vmem_limit_bytes=vmem2),
    )(q_p, absk_p, ckv_b, v_hm, wout_p, bout_p)

    return ctx_p[:, :T, :d_out], ckv_f32[:, :T, :dc]


# --------------------------------------------------------------------------
# Pure-JAX reference mirroring the PyTorch forward (f32).
# --------------------------------------------------------------------------
def mla_reference(x, params, *, num_heads, past_length=0, eps=1e-5):
    b, T, d_in = x.shape
    w_q, w_kv, w_uk, w_uv, w_out, b_out, gamma, beta = (
        params["w_q"], params["w_kv"], params["w_uk"], params["w_uv"],
        params["w_out"], params["b_out"], params["gamma"], params["beta"])
    d_out = w_q.shape[0]
    head_dim = d_out // num_heads

    absorbed_k = (w_q @ w_uk).reshape(num_heads, head_dim, -1)
    ckv_pre = x @ w_kv.T
    mu = ckv_pre.mean(-1, keepdims=True)
    var = ((ckv_pre - mu) ** 2).mean(-1, keepdims=True)
    c_kv = (ckv_pre - mu) / jnp.sqrt(var + eps) * gamma + beta
    S = c_kv.shape[1]
    v_full = c_kv @ w_uv.T
    v = v_full.reshape(b, S, num_heads, head_dim).transpose(0, 2, 1, 3)
    q = x.reshape(b, T, num_heads, head_dim)

    scores = jnp.einsum("bthd,hdc,bsc->bhts", q, absorbed_k, c_kv)
    scores = scores / head_dim ** 0.5
    mask = jnp.tril(jnp.ones((T, S)), k=past_length)
    scores = jnp.where(mask[None, None] == 0, -jnp.inf, scores)
    attn = jax.nn.softmax(scores, axis=-1)
    ctx = jnp.einsum("bhts,bhsd->bthd", attn, v).reshape(b, T, d_out)
    return ctx @ w_out.T + b_out, c_kv


if __name__ == "__main__":
    # Small, module-consistent shapes: d_in == d_out (absorbed matmul / q view),
    # d_out divisible by num_heads and by 3.  T=40 with q_tile=32, kv_tile=16
    # exercises decoupled q/kv tiles, multi-tile flash attention, causal
    # tile skipping (clamped index maps), edge vs interior masking, and padding.
    b, T = 2, 40
    d_in = d_out = 48
    num_heads = 4
    dc = d_out // 3          # 16

    key = jax.random.PRNGKey(0)
    ks = jax.random.split(key, 8)
    params = {
        "w_q":   jax.random.normal(ks[0], (d_out, d_in), jnp.float32) * 0.05,
        "w_kv":  jax.random.normal(ks[1], (dc, d_in),   jnp.float32) * 0.05,
        "w_uk":  jax.random.normal(ks[2], (d_out, dc),  jnp.float32) * 0.05,
        "w_uv":  jax.random.normal(ks[3], (d_out, dc),  jnp.float32) * 0.05,
        "w_out": jax.random.normal(ks[4], (d_out, d_out), jnp.float32) * 0.05,
        "b_out": jax.random.normal(ks[5], (d_out,), jnp.float32) * 0.05,
        "gamma": jnp.ones((dc,), jnp.float32),
        "beta":  jnp.zeros((dc,), jnp.float32),
    }
    x = jax.random.normal(ks[6], (b, T, d_in), jnp.float32)

    ctx, c_kv = mla_forward(x, params, num_heads=num_heads,
                            q_tile=32, kv_tile=16)
    jax.block_until_ready((ctx, c_kv))

    ctx_ref, c_kv_ref = mla_reference(x, params, num_heads=num_heads)
    assert ctx.shape == (b, T, d_out) and c_kv.shape == (b, T, dc)
    # bf16 MXU operands (f32 accumulation) -> loosened tolerance vs f32 reference.
    np.testing.assert_allclose(np.asarray(ctx), np.asarray(ctx_ref),
                               rtol=2e-2, atol=2e-2)
    np.testing.assert_allclose(np.asarray(c_kv), np.asarray(c_kv_ref),
                               rtol=2e-2, atol=2e-2)
    print("KERNEL_OK")
</pallas_src>

<mosaic_0001>
module attributes {stable_mosaic.version = 11 : i64} {
  func.func @_ckv_v_kernel(%arg0: i32, %arg1: i32, %arg2: memref<1x16x48xbf16, #tpu.memory_space<vmem>>, %arg3: memref<48x128xbf16, #tpu.memory_space<vmem>>, %arg4: memref<1x128xf32, #tpu.memory_space<vmem>>, %arg5: memref<1x128xf32, #tpu.memory_space<vmem>>, %arg6: memref<128x512xbf16, #tpu.memory_space<vmem>>, %arg7: memref<1x16x128xf32, #tpu.memory_space<vmem>>, %arg8: memref<1x16x128xbf16, #tpu.memory_space<vmem>>, %arg9: memref<1x4x16x128xbf16, #tpu.memory_space<vmem>>) attributes {dimension_semantics = [#tpu.dimension_semantics<parallel>, #tpu.dimension_semantics<parallel>], iteration_bounds = array<i64: 2, 4>, scalar_prefetch = 0 : i64, scratch_operands = 0 : i64, tpu.core_type = #tpu.core_type<tc>, window_params = [{transform_indices = @transform_0, window_bounds = array<i64: 1, 16, 48>}, {pipeline_mode = #tpu.pipeline_mode<synchronous>, transform_indices = @transform_1, window_bounds = array<i64: 48, 128>}, {pipeline_mode = #tpu.pipeline_mode<synchronous>, transform_indices = @transform_2, window_bounds = array<i64: 1, 128>}, {pipeline_mode = #tpu.pipeline_mode<synchronous>, transform_indices = @transform_3, window_bounds = array<i64: 1, 128>}, {pipeline_mode = #tpu.pipeline_mode<synchronous>, transform_indices = @transform_4, window_bounds = array<i64: 128, 512>}, {transform_indices = @transform_5, window_bounds = array<i64: 1, 16, 128>}, {transform_indices = @transform_6, window_bounds = array<i64: 1, 16, 128>}, {transform_indices = @transform_7, window_bounds = array<i64: 1, 4, 16, 128>}]} {
    %c0 = arith.constant 0 : index
    %c0_0 = arith.constant 0 : index
    %c0_1 = arith.constant 0 : index
    %0 = vector.load %arg2[%c0, %c0_0, %c0_1] : memref<1x16x48xbf16, #tpu.memory_space<vmem>>, vector<1x16x48xbf16>
    %1 = vector.shape_cast %0 : vector<1x16x48xbf16> to vector<16x48xbf16>
    %c0_2 = arith.constant 0 : index
    %c0_3 = arith.constant 0 : index
    %2 = vector.load %arg3[%c0_2, %c0_3] : memref<48x128xbf16, #tpu.memory_space<vmem>>, vector<48x128xbf16>
    %cst = arith.constant dense<0.000000e+00> : vector<16x128xf32>
    %3 = tpu.matmul %1, %2, %cst {dimension_numbers = #tpu.dot_dimension_numbers<[1], [0], [0], [1], [0, 0, 1, 1], [], []>} : vector<16x48xbf16>, vector<48x128xbf16>, vector<16x128xf32> -> vector<16x128xf32>
    %cst_4 = arith.constant dense<0.000000e+00> : vector<16xf32>
    %4 = vector.multi_reduction <add>, %3, %cst_4 [1] : vector<16x128xf32> to vector<16xf32>
    %5 = vector.shape_cast %4 : vector<16xf32> to vector<16x1xf32>
    %cst_5 = arith.constant 6.250000e-02 : f32
    %6 = vector.broadcast %cst_5 : f32 to vector<16x1xf32>
    %7 = arith.mulf %5, %6 : vector<16x1xf32>
    %8 = vector.broadcast %7 : vector<16x1xf32> to vector<16x128xf32>
    %9 = arith.subf %3, %8 : vector<16x128xf32>
    %10 = arith.mulf %9, %9 : vector<16x128xf32>
    %cst_6 = arith.constant dense<0.000000e+00> : vector<16xf32>
    %11 = vector.multi_reduction <add>, %10, %cst_6 [1] : vector<16x128xf32> to vector<16xf32>
    %12 = vector.shape_cast %11 : vector<16xf32> to vector<16x1xf32>
    %cst_7 = arith.constant 1.120000e+02 : f32
    %13 = vector.broadcast %cst_7 : f32 to vector<16x1xf32>
    %14 = arith.mulf %13, %7 : vector<16x1xf32>
    %15 = arith.mulf %14, %7 : vector<16x1xf32>
    %16 = arith.subf %12, %15 : vector<16x1xf32>
    %cst_8 = arith.constant 6.250000e-02 : f32
    %17 = vector.broadcast %cst_8 : f32 to vector<16x1xf32>
    %18 = arith.mulf %16, %17 : vector<16x1xf32>
    %cst_9 = arith.constant 9.99999974E-6 : f32
    %19 = vector.broadcast %cst_9 : f32 to vector<16x1xf32>
    %20 = arith.addf %18, %19 : vector<16x1xf32>
    %21 = math.rsqrt %20 : vector<16x1xf32>
    %22 = vector.broadcast %21 : vector<16x1xf32> to vector<16x128xf32>
    %23 = arith.mulf %9, %22 : vector<16x128xf32>
    %c0_10 = arith.constant 0 : index
    %c0_11 = arith.constant 0 : index
    %24 = vector.load %arg4[%c0_10, %c0_11] : memref<1x128xf32, #tpu.memory_space<vmem>>, vector<1x128xf32>
    %25 = vector.broadcast %24 : vector<1x128xf32> to vector<16x128xf32>
    %26 = arith.mulf %23, %25 : vector<16x128xf32>
    %c0_12 = arith.constant 0 : index
    %c0_13 = arith.constant 0 : index
    %27 = vector.load %arg5[%c0_12, %c0_13] : memref<1x128xf32, #tpu.memory_space<vmem>>, vector<1x128xf32>
    %28 = vector.broadcast %27 : vector<1x128xf32> to vector<16x128xf32>
    %29 = arith.addf %26, %28 : vector<16x128xf32>
    %c0_14 = arith.constant 0 : index
    %c0_15 = arith.constant 0 : index
    %c0_16 = arith.constant 0 : index
    %30 = vector.load %arg7[%c0_14, %c0_15, %c0_16] : memref<1x16x128xf32, #tpu.memory_space<vmem>>, vector<1x16x128xf32>
    %31 = vector.shape_cast %30 : vector<1x16x128xf32> to vector<16x128xf32>
    %32 = vector.shape_cast %29 : vector<16x128xf32> to vector<1x16x128xf32>
    tpu.vector_store %arg7[%c0_14, %c0_15, %c0_16], %32 {strides = array<i32>} : memref<1x16x128xf32, #tpu.memory_space<vmem>>, vector<1x16x128xf32>,
    %33 = arith.truncf %29 : vector<16x128xf32> to vector<16x128xbf16>
    %c0_17 = arith.constant 0 : index
    %c0_18 = arith.constant 0 : index
    %c0_19 = arith.constant 0 : index
    %34 = vector.load %arg8[%c0_17, %c0_18, %c0_19] : memref<1x16x128xbf16, #tpu.memory_space<vmem>>, vector<1x16x128xbf16>
    %35 = vector.shape_cast %34 : vector<1x16x128xbf16> to vector<16x128xbf16>
    %36 = vector.shape_cast %33 : vector<16x128xbf16> to vector<1x16x128xbf16>
    tpu.vector_store %arg8[%c0_17, %c0_18, %c0_19], %36 {strides = array<i32>} : memref<1x16x128xbf16, #tpu.memory_space<vmem>>, vector<1x16x128xbf16>,
    %c0_20 = arith.constant 0 : index
    %c0_21 = arith.constant 0 : index
    %37 = vector.load %arg6[%c0_20, %c0_21] : memref<128x512xbf16, #tpu.memory_space<vmem>>, vector<128x512xbf16>
    %cst_22 = arith.constant dense<0.000000e+00> : vector<16x512xf32>
    %38 = tpu.matmul %33, %37, %cst_22 {dimension_numbers = #tpu.dot_dimension_numbers<[1], [0], [0], [1], [0, 0, 1, 1], [], []>} : vector<16x128xbf16>, vector<128x512xbf16>, vector<16x512xf32> -> vector<16x512xf32>
    %39 = arith.truncf %38 : vector<16x512xf32> to vector<16x512xbf16>
    %40 = vector.extract_strided_slice %39 {offsets = [0, 0], sizes = [16, 128], strides = [1, 1]} : vector<16x512xbf16> to vector<16x128xbf16>
    %c0_23 = arith.constant 0 : index
    %c0_24 = arith.constant 0 : index
    %c0_25 = arith.constant 0 : index
    %c0_26 = arith.constant 0 : index
    %41 = vector.load %arg9[%c0_23, %c0_24, %c0_25, %c0_26] : memref<1x4x16x128xbf16, #tpu.memory_space<vmem>>, vector<1x1x16x128xbf16>
    %42 = vector.shape_cast %41 : vector<1x1x16x128xbf16> to vector<16x128xbf16>
    %43 = vector.shape_cast %40 : vector<16x128xbf16> to vector<1x1x16x128xbf16>
    tpu.vector_store %arg9[%c0_23, %c0_24, %c0_25, %c0_26], %43 {strides = array<i32>} : memref<1x4x16x128xbf16, #tpu.memory_space<vmem>>, vector<1x1x16x128xbf16>,
    %44 = vector.extract_strided_slice %39 {offsets = [0, 128], sizes = [16, 128], strides = [1, 1]} : vector<16x512xbf16> to vector<16x128xbf16>
    %c0_27 = arith.constant 0 : index
    %c1 = arith.constant 1 : index
    %c0_28 = arith.constant 0 : index
    %c0_29 = arith.constant 0 : index
    %45 = vector.load %arg9[%c0_27, %c1, %c0_28, %c0_29] : memref<1x4x16x128xbf16, #tpu.memory_space<vmem>>, vector<1x1x16x128xbf16>
    %46 = vector.shape_cast %45 : vector<1x1x16x128xbf16> to vector<16x128xbf16>
    %47 = vector.shape_cast %44 : vector<16x128xbf16> to vector<1x1x16x128xbf16>
    tpu.vector_store %arg9[%c0_27, %c1, %c0_28, %c0_29], %47 {strides = array<i32>} : memref<1x4x16x128xbf16, #tpu.memory_space<vmem>>, vector<1x1x16x128xbf16>,
    %48 = vector.extract_strided_slice %39 {offsets = [0, 256], sizes = [16, 128], strides = [1, 1]} : vector<16x512xbf16> to vector<16x128xbf16>
    %c0_30 = arith.constant 0 : index
    %c2 = arith.constant 2 : index
    %c0_31 = arith.constant 0 : index
    %c0_32 = arith.constant 0 : index
    %49 = vector.load %arg9[%c0_30, %c2, %c0_31, %c0_32] : memref<1x4x16x128xbf16, #tpu.memory_space<vmem>>, vector<1x1x16x128xbf16>
    %50 = vector.shape_cast %49 : vector<1x1x16x128xbf16> to vector<16x128xbf16>
    %51 = vector.shape_cast %48 : vector<16x128xbf16> to vector<1x1x16x128xbf16>
    tpu.vector_store %arg9[%c0_30, %c2, %c0_31, %c0_32], %51 {strides = array<i32>} : memref<1x4x16x128xbf16, #tpu.memory_space<vmem>>, vector<1x1x16x128xbf16>,
    %52 = vector.extract_strided_slice %39 {offsets = [0, 384], sizes = [16, 128], strides = [1, 1]} : vector<16x512xbf16> to vector<16x128xbf16>
    %c0_33 = arith.constant 0 : index
    %c3 = arith.constant 3 : index
    %c0_34 = arith.constant 0 : index
    %c0_35 = arith.constant 0 : index
    %53 = vector.load %arg9[%c0_33, %c3, %c0_34, %c0_35] : memref<1x4x16x128xbf16, #tpu.memory_space<vmem>>, vector<1x1x16x128xbf16>
    %54 = vector.shape_cast %53 : vector<1x1x16x128xbf16> to vector<16x128xbf16>
    %55 = vector.shape_cast %52 : vector<16x128xbf16> to vector<1x1x16x128xbf16>
    tpu.vector_store %arg9[%c0_33, %c3, %c0_34, %c0_35], %55 {strides = array<i32>} : memref<1x4x16x128xbf16, #tpu.memory_space<vmem>>, vector<1x1x16x128xbf16>,
    return
  }
  func.func @transform_0(%arg0: i32, %arg1: i32) -> (i32, i32, i32) {
    %c0_i32 = arith.constant 0 : i32
    %c0_i32_0 = arith.constant 0 : i32
    return %arg0, %arg1, %c0_i32 : i32, i32, i32
  }
  func.func @transform_1(%arg0: i32, %arg1: i32) -> (i32, i32) {
    %c0_i32 = arith.constant 0 : i32
    %c0_i32_0 = arith.constant 0 : i32
    %c0_i32_1 = arith.constant 0 : i32
    return %c0_i32, %c0_i32_0 : i32, i32
  }
  func.func @transform_2(%arg0: i32, %arg1: i32) -> (i32, i32) {
    %c0_i32 = arith.constant 0 : i32
    %c0_i32_0 = arith.constant 0 : i32
    %c0_i32_1 = arith.constant 0 : i32
    return %c0_i32, %c0_i32_0 : i32, i32
  }
  func.func @transform_3(%arg0: i32, %arg1: i32) -> (i32, i32) {
    %c0_i32 = arith.constant 0 : i32
    %c0_i32_0 = arith.constant 0 : i32
    %c0_i32_1 = arith.constant 0 : i32
    return %c0_i32, %c0_i32_0 : i32, i32
  }
  func.func @transform_4(%arg0: i32, %arg1: i32) -> (i32, i32) {
    %c0_i32 = arith.constant 0 : i32
    %c0_i32_0 = arith.constant 0 : i32
    %c0_i32_1 = arith.constant 0 : i32
    return %c0_i32, %c0_i32_0 : i32, i32
  }
  func.func @transform_5(%arg0: i32, %arg1: i32) -> (i32, i32, i32) {
    %c0_i32 = arith.constant 0 : i32
    %c0_i32_0 = arith.constant 0 : i32
    return %arg0, %arg1, %c0_i32 : i32, i32, i32
  }
  func.func @transform_6(%arg0: i32, %arg1: i32) -> (i32, i32, i32) {
    %c0_i32 = arith.constant 0 : i32
    %c0_i32_0 = arith.constant 0 : i32
    return %arg0, %arg1, %c0_i32 : i32, i32, i32
  }
  func.func @transform_7(%arg0: i32, %arg1: i32) -> (i32, i32, i32, i32) {
    %c0_i32 = arith.constant 0 : i32
    %c0_i32_0 = arith.constant 0 : i32
    %c0_i32_1 = arith.constant 0 : i32
    return %arg0, %c0_i32, %arg1, %c0_i32_0 : i32, i32, i32, i32
  }
}

</mosaic_0001>

<bundles_post_ra>
// kernel: tpu_custom_call.1
= control target key start
LH: loop header
LB: loop body
LE: loop exit
PB: predicated region body
PF: predicated region fallthrough
CT: control target
= control target key end

     0   :  { %s1867_s0 = inlined_call_operand.vmem [shape: bf16[2,64,48], index: 0, kind: input, shape index: {}]   ;;  %s1868_s1 = inlined_call_operand.vmem [shape: bf16[48,128], index: 1, kind: input, shape index: {}]   ;;  %s1869_s2 = inlined_call_operand.vmem [shape: f32[1,128], index: 2, kind: input, shape index: {}]   ;;  %s1870_s3 = inlined_call_operand.vmem [shape: f32[1,128], index: 3, kind: input, shape index: {}]   ;;  %s1871_s4 = inlined_call_operand.hbm [shape: bf16[128,512], index: 4, kind: input, shape index: {}]   ;;  %s1872_s5 = inlined_call_operand.hbm [shape: f32[2,64,128], index: 5, kind: output, shape index: {0}]   ;;  %s1873_s6 = inlined_call_operand.hbm [shape: bf16[2,64,128], index: 6, kind: output, shape index: {1}]   ;;  %s1874_s7 = inlined_call_operand.hbm [shape: bf16[2,4,64,128], index: 7, kind: output, shape index: {2}]  }
   0x1   :  { %1883 = sst [smem:[#allocation18_spill]] %s1867_s0 }
   0x2   :  { %1884 = sst [smem:[#allocation19_spill]] %s1868_s1 }
   0x3   :  { %1885 = sst [smem:[#allocation20_spill]] %s1871_s4 }
   0x4   :  { %13 = vsyncpa [#allocation3], 0 }
   0x5   :  { %14 = vsyncpa [#allocation4], 0 }
   0x6   :  { %16 = vsyncpa [#allocation4 + $0x1], 0 }
   0x7   :  { %17 = vsyncpa [#allocation7], 0 }
   0x8   :  { %19 = vsyncpa [#allocation7 + $0x1], 0  ;;  %s1578_s24 = smov 0   ;;  %s1580_s25 = smov 0  }
   0x9   :  { %s1582_s26 = smov 0   ;;  %s1584_s27 = smov 0  }
   0xa   :  { %s1586_s28 = smov 0   ;;  %s1588_s29 = smov 0  }
   0xb   :  { %s1590_s30 = smov 0   ;;  %s1592_s8 = smov 0  }
   0xc LB: > { %1886 = sst [smem:[#allocation14_spill]] %s1509_s29  ;;  %s1619_s9 = sadd.s32 4294967295, %s1517_s8   ;;  %s1517_s8 = sphi %s1592_s8, %s25_s8   ;;  %s1513_s30 = sphi %s1590_s30, %s1907_s30   ;;  %s1509_s29 = sphi %s1588_s29, %s1906_s29   ;;  %s1505_s28 = sphi %s1586_s28, %s1905_s28   ;;  %s1501_s27 = sphi %s1584_s27, %s1904_s27   ;;  %s1497_s26 = sphi %s1582_s26, %s1910_s26   ;;  %s1493_s25 = sphi %s1580_s25, %s1909_s25   ;;  %s1489_s24 = sphi %s1578_s24, %s1908_s24  }
   0xd   : > { %1887 = sst [smem:[#allocation15_spill]] %s1513_s30  ;;  %s1875_s10 = sadd.s32 4294967294, %s1517_s8  }
   0xe   : > { %s34_s11 = sadd.s32 1, %s1509_s29  ;;  %s37_s12 = sadd.s32 1, %s1513_s30 }
   0xf   : > { %p35_p0 = scmp.ge.s32.totalorder %s34_s11, 4  ;;  %s158_s13 = sadd.s32 1, %s1497_s26 }
  0x10   : > { %p168_p1 = scmp.ne.s32.totalorder %s1497_s26, %s1493_s25  ;;  %p169_p2 = scmp.eq.s32.totalorder %s1619_s9, 7 }
  0x11   : > { %s1912_s11 = smov (%p35_p0, %s34_s11), 0  ;;  %s1914_s12 = smov (!%p35_p0, %s37_s12), %s1513_s30 }
  0x12   : > { %1888 = sst [smem:[#allocation16_spill]] %s1912_s11  ;;  %s154_s14 = ssub.s32 %s1509_s29, %s1912_s11 }
  0x13   : > { %p1633_p3 = por %p169_p2, %p168_p1  ;;  %p39_p4 = scmp.ge.s32.totalorder %s1914_s12, 2 }
  0x14   : > { %p174_p5 = scmp.ne.s32.totalorder %s1493_s25, %s1489_s24  ;;  %p175_p6 = scmp.eq.s32.totalorder %s1875_s10, 7 }
  0x15   : > { %s1889_s15 = scalar_select %p1633_p3, 1, 0 }
  0x16   : > { %p1057_p7 = scmp.ge.s32.totalorder %s1517_s8, 1  ;;  %s1916_s12 = smov (%p39_p4, %s1914_s12), 0 }
  0x17   : > { %1890 = sst [smem:[#allocation17_spill]] %s1916_s12  ;;  %p1644_p8 = por %p175_p6, %p174_p5 }
  0x18   : > { %p238_p9 = scmp.lt.s32.totalorder %s1517_s8, 9  ;;  %s153_s17 = ssub.s32 %s1513_s30, %s1916_s12 }
  0x19   : > { %s1891_s16 = scalar_select %p1644_p8, 1, 0 }
  0x1a   : > { %s155_s18 = sor.u32 %s154_s14, %s153_s17  ;;  %p1651_p10 = pnand %p1057_p7, %p238_p9 }
  0x1b   : > { %p156_p11 = scmp.eq.s32.totalorder %s155_s18, 0  ;;  %p1878_p12 = scmp.eq.s32.totalorder %s1619_s9, 0 }
  0x1c   : > { %s1892_s19 = scalar_select %p1651_p10, 1, 0 }
  0x1d   : > { %p1205_p13 = pneg %p1651_p10  ;;  %s1519_s21 = smov [#allocation2]  }
  0x1e   : > { %s1659_s20 = scalar_select %p156_p11, %s1497_s26, %s158_s13  }
  0x1f   : > { %s259_s22 = sshll.u32 %s1519_s21, 4  ;;  %p1663_p0 = pnand %p1878_p12, %p1205_p13  ;;  %s260_s22 = int_to_ptr.vmem [resolvable:$true] %s259_s22 }
  0x20   : > { %s1894_s4 = sld [smem:[#allocation20_spill]] }
  0x21   : > { %p1361_p2 = pneg %p1663_p0 }
  0x26   : > { %s1359_s10 = scalar_lea.hbm %s1894_s4, 4096 }
  0x27   : > { %p1360_p1 = scmp.ne.s32.totalorder %s1894_s4, %s1359_s10  ;;  %p1366_p6 = scmp.lt.u32.totalorder %s1359_s10, %s1894_s4 }
  0x29   : > { %p1362_p4 = pnand %p1361_p2, %p1360_p1 }
  0x2b   : > { %p1363_p5 = pneg %p1362_p4 }
  0x2d   : > { %p1368_p7 = pnand %p1366_p6, %p1363_p5 }
  0x2f   : > { %1371 = shalt.err (!%p1368_p7)
}
  0x30   : > { %s1372_s11 = scalar_lea.vmem %s260_s22, 4096  ;;  %p1380_p12 = scmp.lt.s32.totalorder %s260_s22, %s260_s22 }
  0x31   : > { %p1373_p9 = scmp.ne.s32.totalorder %s260_s22, %s1372_s11  ;;  %p1381_p8 = scmp.lt.s32.totalorder %s1372_s11, %s1372_s11 }
  0x33   : > { %p1375_p11 = pnand %p1373_p9, %p1361_p2  ;;  %p1382_p3 = por %p1381_p8, %p1380_p12 }
  0x35   : > { %p1376_p13 = pneg %p1375_p11 }
  0x37   : > { %p1383_p10 = pnand %p1382_p3, %p1376_p13 }
  0x39   : > { %1386 = shalt.err (!%p1383_p10)
}
  0x3a   : > { %s1520_s12 = smov 256   ;;  %s1521_s14 = smov 16  }
  0x3b   : > { %1208 = dma.hbm_to_vmem [thread:$0]  (!%p1663_p0), %s1894_s4, 4096, %s260_s22, [#allocation3], %s1520_s12, %s1520_s12, %s1521_s14  }
  0x3c   : > { %p1895_p1 = scmp.ne.s32.totalorder %s1892_s19, 0 }
  0x3d   : > { %p1896_p4 = scmp.eq.s32.totalorder (!%p1895_p1), %s1619_s9, 0 }
  0x3e   : > { %288 = sbr.rel (%p1895_p1) target bundleno = 848 (0x350), region = 40 }
  0x45   : > { %1476 = dma.done.wait (%p1896_p4), [#allocation3], 4096   ;;  %p1897_p2 = pmov %p1896_p4 }
  0x46   : > { %s1690_s10 = sshll.u32 %s1501_s27, 1  ;;  %p335_p3 = scmp.lt.s32.totalorder %s1505_s28, 1  ;;  %v1522_v0 = vmov 0.0   ;;  %vm1523_vm0 = vmmov 0   ;;  %vm379_vm1 = vcmask 392192   ;;  %v1524_v43 = vmov 0  }
  0x47   : > { %1478 = vsyncadd (%p1897_p2), [#allocation3], 4294963200  ;;  %1179 = vmatprep.subr.bf16.mxu0 %v1522_v0  ;;  %1185 = vmatprep.mubr.msk.bf16.mxu0 %vm1523_vm0, %v1522_v0  ;;  %p337_p8 = scmp.lt.s32.totalorder %s1690_s10, 7  ;;  %s1898_s1 = sld [smem:[#allocation19_spill]]  ;;  %v1307_v9 = vld [vmem:[#allocation2 + $0x4] ss:$16 sps:$4 sm:$0xff]  }
  0x48   : > { %s336_s11 = scalar_select %p335_p3, %s1505_s28, 1  ;;  %v1309_v10 = vld [vmem:[#allocation2 + $0x8] ss:$16 sps:$4 sm:$0xff]   ;;  %v1311_v11 = vld [vmem:[#allocation2 + $0xc] ss:$16 sps:$4 sm:$0xff]   ;;  %674 = vmatprep.subr.bf16.mxu1 %v1307_v9  ;;  %706 = vmatprep.mubr.bf16.mxu1 %v1524_v43 }
  0x49   : > { %s338_s19 = scalar_select %p337_p8, %s1690_s10, 7  ;;  %v1312_v12 = vld [vmem:[#allocation2] ss:$16 sps:$4 sm:$0xff]   ;;  %v1313_v21 = vld [vmem:[#allocation2 + $0x24] ss:$16 sps:$4 sm:$0xff]  }
  0x4a   : > { %s1066_s22 = sshll.u32 %s336_s11, 3  ;;  %s1899_s0 = sld [smem:[#allocation18_spill]]  ;;  %675 = vmatpush1.bf16.msra.mxu1 %v1312_v12  ;;  %v1317_v22 = vld [vmem:[#allocation2 + $0x2c] ss:$16 sps:$4 sm:$0xff]   ;;  %v1315_v23 = vld [vmem:[#allocation2 + $0x28] ss:$16 sps:$4 sm:$0xff]  }
  0x4b   : > { %s340_s23 = sadd.s32 %s1066_s22, %s338_s19  ;;  %v1318_v24 = vld [vmem:[#allocation2 + $0x20] ss:$16 sps:$4 sm:$0xff]   ;;  %676 = vmatprep.subr.bf16.mxu1 %v1313_v21  ;;  %v1319_v25 = vld [vmem:[#allocation2 + $0x44] ss:$16 sps:$4 sm:$0xff]   ;;  %v1323_v26 = vld [vmem:[#allocation2 + $0x4c] ss:$16 sps:$4 sm:$0xff]  }
  0x4c   : > { %s1067_s13 = sshll.u32 %s340_s23, 2  ;;  %v1321_v27 = vld [vmem:[#allocation2 + $0x48] ss:$16 sps:$4 sm:$0xff]   ;;  %v1324_v28 = vld [vmem:[#allocation2 + $0x40] ss:$16 sps:$4 sm:$0xff]   ;;  %s1127_s12 = sshll.u32 %s1505_s28, 3 }
  0x4d   : > { %v1303_v1 = vld [vmem:[%s1898_s1] sm:$0xff]   ;;  %v1304_v2 = vld [vmem:[%s1898_s1 + $0x8] sm:$0xff]   ;;  %v1305_v3 = vld [vmem:[%s1898_s1 + $0x10] sm:$0xff]   ;;  %s1744_s14 = sadd.s32 %s1127_s12, %s1690_s10  ;;  %p1900_p12 = scmp.ne.s32.totalorder %s1889_s15, 0 }
  0x4e   : > { %1180 = vmatpush3.bf16.msra.mxu0 %v1303_v1  ;;  %677 = vmatpush1.bf16.msra.mxu1 %v1318_v24  ;;  %v1325_v29 = vld [vmem:[#allocation2 + $0x64] ss:$16 sps:$4 sm:$0xff]   ;;  %v1329_v30 = vld [vmem:[#allocation2 + $0x6c] ss:$16 sps:$4 sm:$0xff]   ;;  %v1327_v31 = vld [vmem:[#allocation2 + $0x68] ss:$16 sps:$4 sm:$0xff]  }
  0x4f   : > { %1181 = vmatprep.subr.bf16.mxu0 %v1522_v0  ;;  %678 = vmatprep.subr.bf16.mxu1 %v1319_v25  ;;  %v1330_v32 = vld [vmem:[#allocation2 + $0x60] ss:$16 sps:$4 sm:$0xff]   ;;  %v1331_v33 = vld [vmem:[#allocation2 + $0x84] ss:$16 sps:$4 sm:$0xff]   ;;  %v1333_v34 = vld [vmem:[#allocation2 + $0x88] ss:$16 sps:$4 sm:$0xff]  }
  0x50   : > { %s342_s4 = scalar_lea.vmem %s1899_s0, %s1067_s13  ;;  %v1335_v35 = vld [vmem:[#allocation2 + $0x8c] ss:$16 sps:$4 sm:$0xff]   ;;  %v1336_v36 = vld [vmem:[#allocation2 + $0x80] ss:$16 sps:$4 sm:$0xff]   ;;  %v1337_v37 = vld [vmem:[#allocation2 + $0xa4] ss:$16 sps:$4 sm:$0xff]  }
  0x51   : > { %v1306_v4 = vld [vmem:[%s342_s4] sm:$0xff]   ;;  %v1341_v38 = vld [vmem:[#allocation2 + $0xac] ss:$16 sps:$4 sm:$0xff]   ;;  %v1339_v39 = vld [vmem:[#allocation2 + $0xa8] ss:$16 sps:$4 sm:$0xff]   ;;  %s1727_s4 = sand.u32 1, %s1493_s25  }
  0x52   : > { %1182 = vmatpush3.bf16.msra.mxu0 %v1304_v2  ;;  %679 = vmatpush1.bf16.msra.mxu1 %v1324_v28  ;;  %v1342_v40 = vld [vmem:[#allocation2 + $0xa0] ss:$16 sps:$4 sm:$0xff]   ;;  %v1343_v41 = vld [vmem:[#allocation2 + $0xc4] ss:$16 sps:$4 sm:$0xff]   ;;  %v1347_v42 = vld [vmem:[#allocation2 + $0xcc] ss:$16 sps:$4 sm:$0xff]  }
  0x53   : > { %1183 = vmatprep.subr.bf16.mxu0 %v1522_v0  ;;  %680 = vmatprep.subr.bf16.mxu1 %v1325_v29  ;;  %v1345_v44 = vld [vmem:[#allocation2 + $0xc8] ss:$16 sps:$4 sm:$0xff]   ;;  %v1348_v45 = vld [vmem:[#allocation2 + $0xc0] ss:$16 sps:$4 sm:$0xff]   ;;  %v1349_v46 = vld [vmem:[#allocation2 + $0xe4] ss:$16 sps:$4 sm:$0xff]  }
  0x54   : > { %v1353_v47 = vld [vmem:[#allocation2 + $0xec] ss:$16 sps:$4 sm:$0xff]   ;;  %v1351_v48 = vld [vmem:[#allocation2 + $0xe8] ss:$16 sps:$4 sm:$0xff]   ;;  %v1354_v49 = vld [vmem:[#allocation2 + $0xe0] ss:$16 sps:$4 sm:$0xff]  }
  0x55   : > { %v1073_v63 = vld [vmem:[%s1869_s2] ss:$0 sm:$0xff]  ;;  %s1062_s11 = sshll.u32 %s1727_s4, 4  ;;  %s1063_s23 = sshll.u32 %s1727_s4, 3 }
  0x56   : > { %1184 = vmatpush3.bf16.msra.mxu0 %v1305_v3  ;;  %681 = vmatpush1.bf16.msra.mxu1 %v1330_v32  ;;  %v1074_v1 = vld [vmem:[%s1870_s3] ss:$0 sm:$0xff]  ;;  %s319_s13 = scalar_lea.vmem [#allocation5], %s1062_s11  ;;  %s1739_s21 = scalar_lea.vmem [#allocation6], %s1063_s23 }
  0x57   : > { %717 = vmatprep.subr.bf16.mxu0 %v1311_v11  ;;  %682 = vmatprep.subr.bf16.mxu1 %v1331_v33  ;;  %s829_s27 = sshll.u32 %s319_s13, 4  ;;  %s847_s17 = sshll.u32 %s1739_s21, 4  ;;  %s1746_s27 = int_to_ptr.vmem [resolvable:$true] %s829_s27  ;;  %s1788_s17 = int_to_ptr.vmem [resolvable:$true] %s847_s17 }
  0x58   : > { %s1128_s18 = sshll.u32 %s1744_s14, 7  ;;  %s804_s22 = scalar_lea.sflag [#allocation4], %s1727_s4 }
  0x59   : > { %1186 = vmatmul.mubr.msk.bf16.vlgmr.msra.gmra.mrb[0].mxu0 %vm379_vm1, %v1306_v4  ;;  %s1754_s19 = scalar_lea.hbm %s1872_s5, %s1128_s18  ;;  %s1387_s23 = scalar_lea.vmem %s1746_s27, 256 }
  0x5a   : > { %718 = vmatpush1.bf16.msra.mxu0 %v1309_v10  ;;  %683 = vmatpush1.bf16.msra.mxu1 %v1336_v36  ;;  %p1388_p10 = scmp.ne.s32.totalorder %s1746_s27, %s1387_s23 }
  0x5b   : > { %719 = vmatprep.subr.bf16.mxu0 %v1317_v22  ;;  %684 = vmatprep.subr.bf16.mxu1 %v1337_v37 }
  0x5c   : > { %749 = vmatprep.mubr.bf16.mxu0 %v1524_v43  ;;  %p1389_p0 = pnand %p1388_p10, %p1900_p12 }
  0x5e   : > { %720 = vmatpush1.bf16.msra.mxu0 %v1315_v23  ;;  %685 = vmatpush1.bf16.msra.mxu1 %v1342_v40  ;;  %p1390_p5 = pneg %p1389_p0 }
  0x5f   : > { %721 = vmatprep.subr.bf16.mxu0 %v1323_v26  ;;  %686 = vmatprep.subr.bf16.mxu1 %v1343_v41 }
  0x62   : > { %722 = vmatpush1.bf16.msra.mxu0 %v1321_v27  ;;  %687 = vmatpush1.bf16.msra.mxu1 %v1348_v45 }
  0x63   : > { %723 = vmatprep.subr.bf16.mxu0 %v1329_v30  ;;  %688 = vmatprep.subr.bf16.mxu1 %v1349_v46 }
  0x66   : > { %724 = vmatpush1.bf16.msra.mxu0 %v1327_v31  ;;  %689 = vmatpush1.bf16.msra.mxu1 %v1354_v49 }
  0x67   : > { %725 = vmatprep.subr.bf16.mxu0 %v1335_v35 }
  0x6a   : > { %726 = vmatpush1.bf16.msra.mxu0 %v1333_v34 }
  0x6b   : > { %727 = vmatprep.subr.bf16.mxu0 %v1341_v38 }
  0x6e   : > { %728 = vmatpush1.bf16.msra.mxu0 %v1339_v39 }
  0x6f   : > { %729 = vmatprep.subr.bf16.mxu0 %v1347_v42 }
  0x72   : > { %730 = vmatpush1.bf16.msra.mxu0 %v1345_v44 }
  0x73   : > { %731 = vmatprep.subr.bf16.mxu0 %v1353_v47 }
  0x76   : > { %732 = vmatpush1.bf16.msra.mxu0 %v1351_v48 }
 0x12c   : > { %v417_v5 = vpop.f32.mrb[0].mxu0 }
 0x12d   : > { %424 = vadd.xlane.f32.xlu0 %v417_v5  ;;  %v1187_v6 = vpop.f32.mrb[1].mxu0 }
 0x12e   : > { %v420_v7 = vpop.f32.mrb[2].mxu0 }
 0x12f   : > { %v1188_v8 = vpop.f32.mrb[3].mxu0 }
 0x131   : > { %426 = vadd.xlane.f32.xlu0 %v420_v7 }
 0x1ba   : > { %v425_v13 = vpop.xlane.xlu0 %424 }
 0x1bb   : > { %v1708_v14 = vmul.f32 0.0625, %v425_v13 }
 0x1bd   : > { %v1711_v15 = vsub.f32 %v417_v5, %v1708_v14  ;;  %v438_v50 = vmul.f32 112.0, %v1708_v14 }
 0x1be   : > { %v427_v16 = vpop.xlane.xlu0 %426 }
 0x1bf   : > { %v1713_v17 = vmul.f32 0.0625, %v427_v16  ;;  %v432_v18 = vmul.f32 %v1711_v15, %v1711_v15  ;;  %v440_v52 = vmul.f32 %v438_v50, %v1708_v14 }
 0x1c1   : > { %434 = vadd.xlane.f32.xlu1 %v432_v18  ;;  %v1718_v19 = vsub.f32 %v420_v7, %v1713_v17  ;;  %v439_v51 = vmul.f32 112.0, %v1713_v17 }
 0x1c3   : > { %v433_v20 = vmul.f32 %v1718_v19, %v1718_v19  ;;  %v441_v56 = vmul.f32 %v439_v51, %v1713_v17 }
 0x1c5   : > { %436 = vadd.xlane.f32.xlu1 %v433_v20 }
 0x24e   : > { %v435_v53 = vpop.xlane.xlu1 %434 }
 0x24f   : > { %v442_v54 = vsub.f32 %v435_v53, %v440_v52 }
 0x251   : > { %v444_v55 = vmul.f32 0.0625, %v442_v54 }
 0x252   : > { %v437_v57 = vpop.xlane.xlu1 %436 }
 0x253   : > { %v446_v58 = vadd.f32 1e-05, %v444_v55  ;;  %v443_v59 = vsub.f32 %v437_v57, %v441_v56 }
 0x255   : > { %1355 = vrsqrt.f32 %v446_v58  ;;  %v445_v60 = vmul.f32 0.0625, %v443_v59 }
 0x257   : > { %v447_v61 = vadd.f32 1e-05, %v445_v60 }
 0x259   : > { %1357 = vrsqrt.f32 %v447_v61 }
 0x25f   : > { %v1356_v62 = vpop.eup %1355 }
 0x260   : > { %v450_v0 = vmul.f32 %v1356_v62, %v1711_v15 }
 0x262   : > { %v459_v2 = vmul.f32 %v1073_v63, %v450_v0 }
 0x263   : > { %v1358_v3 = vpop.eup %1357 }
 0x264   : > { %v451_v4 = vmul.f32 %v1358_v3, %v1718_v19  ;;  %v468_v5 = vadd.f32 %v1074_v1, %v459_v2 }
 0x266   : > { %v460_v6 = vmul.f32 %v1073_v63, %v451_v4  ;;  %470 = vst [vmem:[%s319_s13] sm:$0xff] %v468_v5 }
 0x268   : > { %v469_v7 = vadd.f32 %v1074_v1, %v460_v6 }
 0x26a   : > { %471 = vst [vmem:[%s319_s13 + $0x8] sm:$0xff] %v469_v7  ;;  %v472_v8 = vpack.c.bf16 %v469_v7, %v468_v5  ;;  %s1525_s13 = smov [#allocation5]  }
 0x26b   : > { %s1391_s12 = sshll.u32 %s1525_s13, 4  ;;  %s1392_s12 = int_to_ptr.vmem [resolvable:$false] %s1391_s12 }
 0x26c   : > { %1151 = vst [vmem:[%s1739_s21] sm:$0xff] %v472_v8   ;;  %707 = vmatmul.mubr.bf16.vlgmr.msra.gmra.mrb[0].mxu1 %v472_v8  ;;  %750 = vmatmul.mubr.bf16.vlgmr.msra.gmra.mrb[4].mxu0 %v472_v8  ;;  %s1393_s0 = scalar_lea.vmem %s1392_s12, 512  ;;  %p1394_p6 = scmp.lt.s32.totalorder %s1746_s27, %s1392_s12 }
 0x26d   : > { %p1395_p7 = scmp.lt.s32.totalorder %s1393_s0, %s1387_s23 }
 0x26f   : > { %p1396_p9 = por %p1395_p7, %p1394_p6 }
 0x271   : > { %p1397_p11 = pnand %p1396_p9, %p1390_p5 }
 0x273   : > { %1400 = shalt.err (!%p1397_p11)
}
 0x274   : > { %s1401_s18 = scalar_lea.hbm %s1754_s19, 256  ;;  %s1405_s13 = scalar_lea.hbm %s1872_s5, 2048 }
 0x275   : > { %p1402_p13 = scmp.ne.s32.totalorder %s1754_s19, %s1401_s18  ;;  %p1406_p2 = scmp.lt.u32.totalorder %s1754_s19, %s1872_s5 }
 0x276   : > { %p1407_p3 = scmp.lt.u32.totalorder %s1405_s13, %s1401_s18  ;;  %p1409_p10 = scmp.lt.u32.totalorder %s1401_s18, %s1754_s19 }
 0x277   : > { %p1403_p1 = pnand %p1402_p13, %p1900_p12 }
 0x278   : > { %p1408_p8 = por %p1407_p3, %p1406_p2 }
 0x279   : > { %p1404_p4 = pneg %p1403_p1 }
 0x27a   : > { %p1410_p0 = por %p1409_p10, %p1408_p8 }
 0x27c   : > { %p1411_p5 = pnand %p1410_p0, %p1404_p4 }
 0x27e   : > { %1414 = shalt.err (!%p1411_p5)
}
 0x27f   : > { %s1526_s0 = smov 128   ;;  %s1527_s23 = smov 8  }
 0x280   : > { %1193 = dma.vmem_to_hbm [thread:$0]  (%p1900_p12), %s1746_s27, 256, %s1754_s19, %s804_s22, %s1526_s0, %s1526_s0, %s1527_s23  }
 0x281   : > { %s1131_s29 = sshll.u32 %s1744_s14, 6  ;;  %s1901_s13 = sand.u32 1, %s1619_s9  }
 0x282   : > { %s1784_s18 = scalar_lea.hbm %s1873_s6, %s1131_s29  ;;  %s1792_s12 = scalar_lea.sflag [#allocation7], %s1901_s13 }
 0x283   : > { %s1415_s1 = scalar_lea.vmem %s1788_s17, 128  ;;  %s1528_s27 = smov [#allocation6]  }
 0x284   : > { %p1416_p6 = scmp.ne.s32.totalorder %s1788_s17, %s1415_s1  ;;  %s1419_s14 = sshll.u32 %s1528_s27, 4  ;;  %s1420_s14 = int_to_ptr.vmem [resolvable:$false] %s1419_s14 }
 0x285   : > { %s1421_s19 = scalar_lea.vmem %s1420_s14, 256  ;;  %p1422_p11 = scmp.lt.s32.totalorder %s1788_s17, %s1420_s14 }
 0x286   : > { %p1417_p7 = pnand %p1416_p6, %p1900_p12  ;;  %p1423_p13 = scmp.lt.s32.totalorder %s1421_s19, %s1415_s1 }
 0x288   : > { %p1418_p9 = pneg %p1417_p7  ;;  %p1424_p1 = por %p1423_p13, %p1422_p11 }
 0x28a   : > { %p1425_p4 = pnand %p1424_p1, %p1418_p9 }
 0x28c   : > { %1428 = shalt.err (!%p1425_p4)
}
 0x28d   : > { %s1429_s9 = scalar_lea.hbm %s1784_s18, 128  ;;  %s1433_s0 = scalar_lea.hbm %s1873_s6, 1024 }
 0x28e   : > { %p1430_p2 = scmp.ne.s32.totalorder %s1784_s18, %s1429_s9  ;;  %p1434_p10 = scmp.lt.u32.totalorder %s1784_s18, %s1873_s6 }
 0x28f   : > { %p1435_p0 = scmp.lt.u32.totalorder %s1433_s0, %s1429_s9  ;;  %p1437_p6 = scmp.lt.u32.totalorder %s1429_s9, %s1784_s18 }
 0x290   : > { %p1431_p3 = pnand %p1430_p2, %p1900_p12 }
 0x291   : > { %p1436_p5 = por %p1435_p0, %p1434_p10 }
 0x292   : > { %p1432_p8 = pneg %p1431_p3 }
 0x293   : > { %p1438_p7 = por %p1437_p6, %p1436_p5 }
 0x295   : > { %p1439_p9 = pnand %p1438_p7, %p1432_p8 }
 0x297   : > { %1442 = shalt.err (!%p1439_p9)
}
 0x298   : > { %s1529_s1 = smov 64   ;;  %s1530_s30 = smov 4  }
 0x299   : > { %1194 = dma.vmem_to_hbm [thread:$0]  (%p1900_p12), %s1788_s17, 128, %s1784_s18, %s1792_s12, %s1529_s1, %s1529_s1, %s1530_s30  }
 0x29a   : > { %s1064_s11 = sshll.u32 %s1727_s4, 5 }
 0x29b   : > { %s333_s13 = scalar_lea.vmem [#allocation8], %s1064_s11 }
 0x33f   : > { %v708_v9 = vpop.f32.mrb[0].mxu1  ;;  %v751_v10 = vpop.f32.mrb[4].mxu0 }
 0x340   : > { %v710_v11 = vpop.f32.mrb[1].mxu1  ;;  %v753_v12 = vpop.f32.mrb[5].mxu0 }
 0x341   : > { %v712_v13 = vpop.f32.mrb[2].mxu1  ;;  %v755_v14 = vpop.f32.mrb[6].mxu0 }
 0x342   : > { %v1155_v15 = vpack.c.bf16 %v712_v13, %v708_v9  ;;  %v1165_v16 = vpack.c.bf16 %v755_v14, %v751_v10  ;;  %v714_v17 = vpop.f32.mrb[3].mxu1  ;;  %v757_v18 = vpop.f32.mrb[7].mxu0 }
 0x343   : > { %v1160_v19 = vpack.c.bf16 %v714_v17, %v710_v11  ;;  %v1170_v20 = vpack.c.bf16 %v757_v18, %v753_v12 }
 0x344   : > { %1156 = vst [vmem:[%s333_s13] sm:$0xff] %v1155_v15   ;;  %1173 = vst [vmem:[%s333_s13 + $0x10] sm:$0xff] %v1165_v16  }
 0x345   : > { %1172 = vst [vmem:[%s333_s13 + $0x8] sm:$0xff] %v1160_v19   ;;  %1174 = vst [vmem:[%s333_s13 + $0x18] sm:$0xff] %v1170_v20  }
 0x346   : > { %s1133_s4 = sshll.u32 %s1505_s28, 5  ;;  %s881_s17 = sshll.u32 %s333_s13, 4  ;;  %s882_s17 = int_to_ptr.vmem [resolvable:$true] %s881_s17 }
 0x347   : > { %s862_s18 = sadd.s32 %s1133_s4, %s1690_s10  ;;  %s1531_s21 = smov 128  }
 0x348   : > { %s1134_s27 = sshll.u32 %s862_s18, 6  ;;  %1195 = sst [smem:[#allocation10]] (%p1900_p12), %s1531_s21 }
 0x349   : > { %s864_s9 = scalar_lea.hbm %s1874_s7, %s1134_s27  ;;  %s1532_s22 = smov 512  }
 0x34a   : > { %1196 = sst [smem:[#allocation10 + $0x1]] (%p1900_p12), %s1532_s22  ;;  %s1533_s0 = smov 2  }
 0x34b   : > { %1197 = sst [smem:[#allocation10 + $0x2]] (%p1900_p12), %s1533_s0  ;;  %s1534_s28 = smov 64  }
 0x34c   : > { %1198 = sst [smem:[#allocation10 + $0x3]] (%p1900_p12), %s1534_s28  ;;  %s1535_s10 = smov 4  }
 0x34d   : > { %1199 = sst [smem:[#allocation10 + $0x4]] (%p1900_p12), %s1534_s28  ;;  %s1536_s23 = smov [#allocation9]  }
 0x34e   : > { %1200 = sst [smem:[#allocation10 + $0x5]] (%p1900_p12), %s1535_s10  ;;  %s1537_s29 = smov 0  }
 0x34f   : > { %1201 = dma.general (%p1900_p12), %s882_s17, 512, %s864_s9, %s1792_s12, %s1536_s23, [#allocation10], %s1537_s29, 0  }
 0x350 PF: > { %p1221_p11 = scmp.ge.s32.totalorder %s1517_s8, 2  ;;  %s909_s1 = sand.u32 1, %s1489_s24  }
 0x351   : > { %p1902_p13 = scmp.ne.s32.totalorder %s1891_s16, 0  ;;  %s910_s30 = scalar_lea.sflag [#allocation4], %s909_s1 }
 0x353   : > { %p1210_p1 = pnand %p1221_p11, %p1902_p13 }
 0x355   : > { %1480 = dma.done.wait (!%p1210_p1), %s910_s30, 256  }
 0x356   : > { %1482 = vsyncadd (!%p1210_p1), %s910_s30, 4294967040  ;;  %s1903_s11 = sadd.s32 4294967294, %s1517_s8  }
 0x357   : > { %s918_s13 = sand.u32 1, %s1903_s11  }
 0x358   : > { %s919_s4 = scalar_lea.sflag [#allocation7], %s918_s13 }
 0x359   : > { %1484 = dma.done.wait (!%p1210_p1), %s919_s4, 640  }
 0x35a   : > { %1486 = vsyncadd (!%p1210_p1), %s919_s4, 4294966656  ;;  %s25_s8 = sadd.s32 1, %s1517_s8   ;;  %s1904_s27 = sld [smem:[#allocation14_spill]] }
 0x35b   : > { %p22_p12 = scmp.ge.s32.totalorder %s25_s8, 10   ;;  %s1905_s28 = sld [smem:[#allocation15_spill]] }
 0x35c   : > { %s1906_s29 = sld [smem:[#allocation16_spill]]  ;;  %s1907_s30 = sld [smem:[#allocation17_spill]] }
 0x35d   : > { %s1908_s24 = smov %s1493_s25  ;;  %s1909_s25 = smov %s1497_s26 }
 0x35e   : > { %s1910_s26 = smov %s1659_s20  ;;  %24 = sbr.rel (!%p22_p12) target bundleno = 12 (0xc), region = 120 }
 0x365   :  { %933 = vsyncpa [#allocation3], 1 }
 0x366   :  { %935 = vsyncpa [#allocation3 + $0x1], 1 }
 0x367   :  { %936 = vsyncpa [#allocation4], 1 }
 0x368   :  { %938 = vsyncpa [#allocation4 + $0x1], 1 }
 0x369   :  { %939 = vsyncpa [#allocation7], 1 }
 0x36a   :  { %941 = vsyncpa [#allocation7 + $0x1], 1 }

</bundles_post_ra>
